<compile_context>
chip_gen: v7x
topology: tpu7x:2x2x1
jax: 0.10.0
libtpu: 0.0.40
codegen_flags: <defaults>
</compile_context>

<pallas_src>
import jax
import jax.numpy as jnp
from jax import lax
from jax.experimental import pallas as pl
from jax.experimental.pallas import tpu as pltpu


# ----------------------------------------------------------------------------- kernel
def salhead_kernel(x_ref, p_ref, o_ref):
    # x_ref: (N, C, HW)  whole input (channels on sublanes, flat spatial on lanes)
    # p_ref: (1, C+1)    lane-dense packed params: lanes [0:C] = weight, lane C = bias
    # o_ref: (N, HW)     whole lane-dense output slab
    x = x_ref[...].astype(jnp.float32)          # in-kernel upcast (no-op for f32)
    C = x.shape[1]

    row = p_ref[...]                            # (1, C+1)
    w_row = row[:, :C]                          # (1, C)   weight along lanes
    b = row[:, C:C + 1]                         # (1, 1)   bias

    # Lane -> sublane relayout of the weight row into a (C, 1) column using only
    # guaranteed-lowerable ops: sublane broadcast + iota diagonal mask + lane
    # reduce.  Stands in for a tiny transpose; runs on otherwise idle XLU/VPU.
    rowb = jnp.broadcast_to(w_row, (C, C))                            # (C, C)
    i = lax.broadcasted_iota(jnp.int32, (C, C), 0)
    j = lax.broadcasted_iota(jnp.int32, (C, C), 1)
    w_col = jnp.sum(jnp.where(i == j, rowb, 0.0), axis=1, keepdims=True)  # (C, 1)

    # 1x1 conv with a single output channel == per-pixel dot over channels:
    # VPU broadcast-multiply, then XLU cross-sublane reduction.
    z = jnp.sum(x * w_col[None, :, :], axis=1) + b                    # (N, HW)

    # Sigmoid via tanh -> EUP slot (VPU stays uncontended).
    y = 0.5 * (jnp.tanh(0.5 * z) + 1.0)

    o_ref[...] = y.astype(o_ref.dtype)


# ----------------------------------------------------------------------------- wrapper
def salhead_pallas(x_nchw, w_oihw, bias):
    N, C, H, W = x_nchw.shape
    HW = H * W

    # Free reshape (NCHW is contiguous in HW) -- no transpose, no wrapper cast.
    x = x_nchw.reshape(N, C, HW)

    # Pack weight (1,C,1,1) and bias (1,) into ONE lane-dense (1, C+1) row ->
    # one contiguous-burst DMA.  NOTE: in a real model this packing should be
    # done once per model (or folded by the surrounding jit), not per call.
    params = jnp.concatenate(
        [w_oihw.reshape(1, C).astype(jnp.float32),
         bias.reshape(1, 1).astype(jnp.float32)],
        axis=1,
    )                                                       # (1, C+1)

    out = pl.pallas_call(
        salhead_kernel,
        out_shape=jax.ShapeDtypeStruct((N, HW), jnp.float32),
        # No grid: single invocation, whole arrays resident in VMEM.
        in_specs=[
            pl.BlockSpec(memory_space=pltpu.MemorySpace.VMEM),   # x  (N, C, HW)
            pl.BlockSpec(memory_space=pltpu.MemorySpace.VMEM),   # params (1, C+1)
        ],
        out_specs=pl.BlockSpec(memory_space=pltpu.MemorySpace.VMEM),
    )(x, params)

    return out.reshape(N, 1, H, W)                          # free reshape back


# ----------------------------------------------------------------------------- pure-JAX reference
def salhead_reference(x_nchw, w_oihw, bias):
    # Dropout2d is identity at inference.
    y = lax.conv_general_dilated(
        x_nchw, w_oihw, (1, 1), 'VALID',
        dimension_numbers=('NCHW', 'OIHW', 'NCHW'),
        precision=lax.Precision.HIGHEST,
    )
    y = y + bias[None, :, None, None]
    return jax.nn.sigmoid(y)


# ----------------------------------------------------------------------------- main
if __name__ == "__main__":
    N, C, H, W = 2, 32, 16, 16

    key = jax.random.PRNGKey(0)
    kx, kw, kb = jax.random.split(key, 3)
    x = jax.random.normal(kx, (N, C, H, W), jnp.float32)
    w = jax.random.normal(kw, (1, C, 1, 1), jnp.float32) * 0.2   # Conv2d(C, 1, 1) weight
    b = jax.random.normal(kb, (1,), jnp.float32) * 0.2           # Conv2d bias

    out = salhead_pallas(x, w, b)
    out = jax.block_until_ready(out)

    ref = salhead_reference(x, w, b)
    max_err = float(jnp.max(jnp.abs(out - ref)))
    assert out.shape == (N, 1, H, W), out.shape
    assert max_err < 1e-4, f"mismatch vs reference: max abs err {max_err}"

    print("KERNEL_OK")
</pallas_src>

<mosaic_0001>
module attributes {stable_mosaic.version = 11 : i64} {
  func.func @salhead_kernel(%arg0: memref<2x32x256xf32, #tpu.memory_space<vmem>>, %arg1: memref<1x33xf32, #tpu.memory_space<vmem>>, %arg2: memref<2x256xf32, #tpu.memory_space<vmem>>) attributes {dimension_semantics = [], scalar_prefetch = 0 : i64, scratch_operands = 0 : i64, tpu.core_type = #tpu.core_type<tc>} {
    %c0 = arith.constant 0 : index
    %c0_0 = arith.constant 0 : index
    %c0_1 = arith.constant 0 : index
    %0 = vector.load %arg0[%c0, %c0_0, %c0_1] : memref<2x32x256xf32, #tpu.memory_space<vmem>>, vector<2x32x256xf32>
    %c0_2 = arith.constant 0 : index
    %c0_3 = arith.constant 0 : index
    %1 = vector.load %arg1[%c0_2, %c0_3] : memref<1x33xf32, #tpu.memory_space<vmem>>, vector<1x33xf32>
    %2 = vector.extract_strided_slice %1 {offsets = [0, 0], sizes = [1, 32], strides = [1, 1]} : vector<1x33xf32> to vector<1x32xf32>
    %3 = vector.extract_strided_slice %1 {offsets = [0, 32], sizes = [1, 1], strides = [1, 1]} : vector<1x33xf32> to vector<1x1xf32>
    %4 = vector.shape_cast %2 : vector<1x32xf32> to vector<1x32xf32>
    %5 = vector.broadcast %4 : vector<1x32xf32> to vector<32x32xf32>
    %6 = tpu.iota {dimensions = array<i32: 0>} : vector<32x32xi32>
    %7 = tpu.iota {dimensions = array<i32: 1>} : vector<32x32xi32>
    %8 = arith.cmpi eq, %6, %7 : vector<32x32xi32>
    %cst = arith.constant 0.000000e+00 : f32
    %9 = vector.broadcast %cst : f32 to vector<32x32xf32>
    %10 = arith.select %8, %5, %9 : vector<32x32xi1>, vector<32x32xf32>
    %cst_4 = arith.constant dense<0.000000e+00> : vector<32xf32>
    %11 = vector.multi_reduction <add>, %10, %cst_4 [1] : vector<32x32xf32> to vector<32xf32>
    %12 = vector.shape_cast %11 : vector<32xf32> to vector<32x1xf32>
    %13 = vector.shape_cast %12 : vector<32x1xf32> to vector<1x32x1xf32>
    %14 = vector.broadcast %13 : vector<1x32x1xf32> to vector<2x32x256xf32>
    %15 = arith.mulf %0, %14 : vector<2x32x256xf32>
    %cst_5 = arith.constant dense<0.000000e+00> : vector<2x256xf32>
    %16 = vector.multi_reduction <add>, %15, %cst_5 [1] : vector<2x32x256xf32> to vector<2x256xf32>
    %17 = vector.broadcast %3 : vector<1x1xf32> to vector<2x256xf32>
    %18 = arith.addf %16, %17 : vector<2x256xf32>
    %cst_6 = arith.constant 5.000000e-01 : f32
    %19 = vector.broadcast %cst_6 : f32 to vector<2x256xf32>
    %20 = arith.mulf %19, %18 : vector<2x256xf32>
    %21 = math.tanh %20 : vector<2x256xf32>
    %cst_7 = arith.constant 1.000000e+00 : f32
    %22 = vector.broadcast %cst_7 : f32 to vector<2x256xf32>
    %23 = arith.addf %21, %22 : vector<2x256xf32>
    %cst_8 = arith.constant 5.000000e-01 : f32
    %24 = vector.broadcast %cst_8 : f32 to vector<2x256xf32>
    %25 = arith.mulf %24, %23 : vector<2x256xf32>
    %c0_9 = arith.constant 0 : index
    %c0_10 = arith.constant 0 : index
    %26 = vector.load %arg2[%c0_9, %c0_10] : memref<2x256xf32, #tpu.memory_space<vmem>>, vector<2x256xf32>
    tpu.vector_store %arg2[%c0_9, %c0_10], %25 {strides = array<i32>} : memref<2x256xf32, #tpu.memory_space<vmem>>, vector<2x256xf32>,
    return
  }
}

</mosaic_0001>

<bundles_post_ra>
// kernel: tpu_custom_call.1
= control target key start
LH: loop header
LB: loop body
LE: loop exit
PB: predicated region body
PF: predicated region fallthrough
CT: control target
= control target key end

     0   :  { %7 = vsyncpa [#allocation3], 0  ;;  %s322_s0 = inlined_call_operand.hbm [shape: f32[2,32,256], index: 0, kind: input, shape index: {}]   ;;  %s323_s1 = inlined_call_operand.vmem [shape: f32[1,33], index: 1, kind: input, shape index: {}]   ;;  %s324_s2 = inlined_call_operand.hbm [shape: f32[2,256], index: 2, kind: output, shape index: {}]  }
   0x1   :  { %8 = vsyncpa [#allocation4], 0  ;;  %s267_s9 = smov [#allocation2]   ;;  %s219_s13 = scalar_lea.hbm %s322_s0, 2048 }
   0x2   :  { %s14_s10 = sshll.u32 %s267_s9, 4  ;;  %p220_p0 = scmp.ne.s32.totalorder %s322_s0, %s219_s13  ;;  %s15_s10 = int_to_ptr.vmem [resolvable:$true] %s14_s10 }
   0x3   :  { %p223_p1 = scmp.lt.u32.totalorder %s219_s13, %s322_s0 }
   0x5   :  { %p225_p2 = pnand %p223_p1, %p220_p0 }
   0x7   :  { %228 = shalt.err (!%p225_p2)
}
   0x8   :  { %s229_s18 = scalar_lea.vmem %s15_s10, 2048  ;;  %p234_p4 = scmp.lt.s32.totalorder %s15_s10, %s15_s10 }
   0x9   :  { %p230_p3 = scmp.ne.s32.totalorder %s15_s10, %s229_s18  ;;  %p235_p5 = scmp.lt.s32.totalorder %s229_s18, %s229_s18 }
   0xb   :  { %p236_p6 = por %p235_p5, %p234_p4 }
   0xd   :  { %p237_p7 = pnand %p236_p6, %p230_p3 }
   0xf   :  { %240 = shalt.err (!%p237_p7)
}
  0x10   :  { %s268_s19 = smov 256   ;;  %s269_s20 = smov 16  }
  0x11   :  { %20 = dma.hbm_to_vmem [thread:$0]  %s322_s0, 2048, %s15_s10, [#allocation3], %s268_s19, %s268_s19, %s269_s20  }
  0x12   :  { %263 = dma.done.wait [#allocation3], 2048  }
  0x13   :  { %264 = vsyncadd [#allocation3], 4294965248  ;;  %v49_v0 = vlaneseq  ;;  %v270_v1 = vmov 32   ;;  %vm64_vm1 = vcmask 261120   ;;  %v203_v7 = vld [vmem:[%s323_s1] ss:$0 sm:$0xff] }
  0x14   :  { %210 = vset.pattern.permute.xlu0 %v270_v1  ;;  %v26_v16 = vld [vmem:[#allocation2] sm:$0xff]  ;;  %v27_v17 = vld [vmem:[#allocation2 + $0x8] sm:$0xff]  ;;  %v28_v26 = vld [vmem:[#allocation2 + $0x10] sm:$0xff]  ;;  %vm178_vm5 = vcmask 1041409   ;;  %vm180_vm6 = vcmask 1043459   ;;  %vm182_vm7 = vcmask 1045509  }
  0x15   :  { %v300_v2 = vshrl.u32 %v49_v0, 7  ;;  %v55_v3 = vand.u32 127, %v49_v0  ;;  %v34_v18 = vld [vmem:[#allocation2 + $0x40] sm:$0xff]  ;;  %v35_v19 = vld [vmem:[#allocation2 + $0x48] sm:$0xff]  ;;  %v29_v27 = vld [vmem:[#allocation2 + $0x18] sm:$0xff]  ;;  %s272_s1 = smov [#allocation5]  }
  0x16   :  { %v30_v22 = vld [vmem:[#allocation2 + $0x20] sm:$0xff]  ;;  %v31_v23 = vld [vmem:[#allocation2 + $0x28] sm:$0xff]  ;;  %v36_v28 = vld [vmem:[#allocation2 + $0x50] sm:$0xff]  ;;  %s194_s24 = sshll.u32 %s272_s1, 4  ;;  %vm184_vm8 = vcmask 1047559   ;;  %s195_s24 = int_to_ptr.vmem [resolvable:$true] %s194_s24 }
  0x17   :  { %v52_v4 = vadd.s32 16, %v300_v2  ;;  %v51_v5 = vadd.s32 8, %v300_v2  ;;  %v53_v6 = vadd.s32 24, %v300_v2  ;;  %vm56_vm0 = vcmp.eq.s32.totalorder %v300_v2, %v55_v3  ;;  %v38_v24 = vld [vmem:[#allocation2 + $0x60] sm:$0xff]  ;;  %v39_v25 = vld [vmem:[#allocation2 + $0x68] sm:$0xff]  ;;  %v37_v29 = vld [vmem:[#allocation2 + $0x58] sm:$0xff]  ;;  %p246_p9 = scmp.lt.s32.totalorder %s195_s24, %s195_s24 }
  0x18   :  { %v60_v8 = vsel %vm56_vm0, %v203_v7, 0.0  ;;  %v32_v30 = vld [vmem:[#allocation2 + $0x30] sm:$0xff]  ;;  %v33_v35 = vld [vmem:[#allocation2 + $0x38] sm:$0xff]  ;;  %s241_s25 = scalar_lea.vmem %s195_s24, 64 }
  0x19   :  { %vm58_vm2 = vcmp.eq.s32.totalorder %v52_v4, %v55_v3  ;;  %vm57_vm3 = vcmp.eq.s32.totalorder %v51_v5, %v55_v3  ;;  %vm59_vm4 = vcmp.eq.s32.totalorder %v53_v6, %v55_v3  ;;  %v65_v12 = vsel %vm64_vm1, %v60_v8, 0.0  ;;  %v40_v36 = vld [vmem:[#allocation2 + $0x70] sm:$0xff]  ;;  %v41_v37 = vld [vmem:[#allocation2 + $0x78] sm:$0xff]  ;;  %p242_p8 = scmp.ne.s32.totalorder %s195_s24, %s241_s25  ;;  %p247_p10 = scmp.lt.s32.totalorder %s241_s25, %s241_s25 }
  0x1a   :  { %v62_v9 = vsel %vm58_vm2, %v203_v7, 0.0  ;;  %v61_v10 = vsel %vm57_vm3, %v203_v7, 0.0  ;;  %v63_v11 = vsel %vm59_vm4, %v203_v7, 0.0  ;;  %66 = vadd.xlane.f32.xlu0 %v65_v12 }
  0x1b   :  { %v71_v13 = vsel %vm64_vm1, %v62_v9, 0.0  ;;  %v68_v14 = vsel %vm64_vm1, %v61_v10, 0.0  ;;  %v74_v15 = vsel %vm64_vm1, %v63_v11, 0.0  ;;  %p248_p11 = por %p247_p10, %p246_p9 }
  0x1c   :  { %72 = vadd.xlane.f32.xlu1 %v71_v13 }
  0x1d   :  { %p249_p12 = pnand %p248_p11, %p242_p8 }
  0x1e   :  { %69 = vadd.xlane.f32.xlu0 %v68_v14 }
  0x20   :  { %75 = vadd.xlane.f32.xlu1 %v74_v15 }
  0x34   :  { %130 = vperm.xlu0 %210, %v203_v7  }
  0xa7   :  { %v67_v20 = vpop.xlane.xlu0 %66 }
  0xa8   :  { %v77_v31 = vmul.f32 %v67_v20, %v26_v16  ;;  %v78_v32 = vmul.f32 %v67_v20, %v27_v17  ;;  %v85_v33 = vmul.f32 %v67_v20, %v34_v18  ;;  %v86_v34 = vmul.f32 %v67_v20, %v35_v19 }
  0xa9   :  { %v73_v21 = vpop.xlane.xlu1 %72 }
  0xaa   :  { %v81_v38 = vmul.f32 %v73_v21, %v30_v22  ;;  %v82_v39 = vmul.f32 %v73_v21, %v31_v23  ;;  %v89_v40 = vmul.f32 %v73_v21, %v38_v24  ;;  %v90_v41 = vmul.f32 %v73_v21, %v39_v25 }
  0xab   :  { %v70_v42 = vpop.xlane.xlu0 %69 }
  0xac   :  { %v79_v44 = vmul.f32 %v70_v42, %v28_v26  ;;  %v80_v45 = vmul.f32 %v70_v42, %v29_v27  ;;  %v87_v46 = vmul.f32 %v70_v42, %v36_v28  ;;  %v88_v47 = vmul.f32 %v70_v42, %v37_v29 }
  0xad   :  { %v76_v43 = vpop.xlane.xlu1 %75 }
  0xae   :  { %v83_v48 = vmul.f32 %v76_v43, %v32_v30  ;;  %v84_v49 = vmul.f32 %v76_v43, %v33_v35  ;;  %v91_v50 = vmul.f32 %v76_v43, %v40_v36  ;;  %v92_v51 = vmul.f32 %v76_v43, %v41_v37 }
  0xaf   :  { %v93_v52 = vadd.f32 %v79_v44, %v77_v31  ;;  %v102_v53 = vadd.f32 %v80_v45, %v78_v32  ;;  %v111_v54 = vadd.f32 %v87_v46, %v85_v33  ;;  %v120_v55 = vadd.f32 %v88_v47, %v86_v34 }
  0xb0   :  { %v271_v34 = vmov 1983009808  }
  0xb1   :  { %v94_v56 = vadd.f32 %v93_v52, %v81_v38  ;;  %v103_v57 = vadd.f32 %v102_v53, %v82_v39  ;;  %v112_v58 = vadd.f32 %v111_v54, %v89_v40  ;;  %v121_v59 = vadd.f32 %v120_v55, %v90_v41 }
  0xb2   :  { %v159_v35 = vunpack.c.l.s4 %v271_v34 }
  0xb3   :  { %v95_v60 = vadd.f32 %v94_v56, %v83_v48  ;;  %v104_v61 = vadd.f32 %v103_v57, %v84_v49  ;;  %v113_v62 = vadd.f32 %v112_v58, %v91_v50  ;;  %v122_v63 = vadd.f32 %v121_v59, %v92_v51  ;;  %v131_v21 = vpop.permute.xlu0 %130 }
  0xb4   :  { %v160_v40 = vunpack.c.0.s8 %v159_v35 }
  0xb5   :  { %v96_v0 = vrot.slane %v95_v60, 4  ;;  %v105_v1 = vrot.slane %v104_v61, 4  ;;  %v114_v3 = vrot.slane %v113_v62, 4  ;;  %v123_v4 = vrot.slane %v122_v63, 4 }
  0xb6   :  { %v163_v48 = vsub.s32 %v160_v40, %v300_v2 }
  0xb7   :  { %v97_v5 = vadd.f32 %v96_v0, %v95_v60  ;;  %v106_v6 = vadd.f32 %v105_v1, %v104_v61  ;;  %v115_v7 = vadd.f32 %v114_v3, %v113_v62  ;;  %v124_v8 = vadd.f32 %v123_v4, %v122_v63 }
  0xb9   :  { %v98_v9 = vrot.slane %v97_v5, 2  ;;  %v107_v10 = vrot.slane %v106_v6, 2  ;;  %v116_v11 = vrot.slane %v115_v7, 2  ;;  %v125_v12 = vrot.slane %v124_v8, 2 }
  0xbb   :  { %v99_v13 = vadd.f32 %v98_v9, %v97_v5  ;;  %v108_v14 = vadd.f32 %v107_v10, %v106_v6  ;;  %v117_v15 = vadd.f32 %v116_v11, %v115_v7  ;;  %v126_v16 = vadd.f32 %v125_v12, %v124_v8 }
  0xbd   :  { %v100_v17 = vrot.slane %v99_v13, 1  ;;  %v109_v18 = vrot.slane %v108_v14, 1  ;;  %v118_v19 = vrot.slane %v117_v15, 1  ;;  %v127_v20 = vrot.slane %v126_v16, 1 }
  0xbf   :  { %v101_v22 = vadd.f32 %v100_v17, %v99_v13  ;;  %v110_v23 = vadd.f32 %v109_v18, %v108_v14  ;;  %v119_v24 = vadd.f32 %v118_v19, %v117_v15  ;;  %v128_v25 = vadd.f32 %v127_v20, %v126_v16 }
  0xc1   :  { %v133_v26 = vadd.f32 %v131_v21, %v101_v22  ;;  %v134_v27 = vadd.f32 %v131_v21, %v110_v23  ;;  %v135_v28 = vadd.f32 %v131_v21, %v119_v24  ;;  %v136_v29 = vadd.f32 %v131_v21, %v128_v25 }
  0xc3   :  { %v137_v30 = vmul.f32 0.5, %v133_v26  ;;  %v138_v31 = vmul.f32 0.5, %v134_v27  ;;  %v139_v32 = vmul.f32 0.5, %v135_v28  ;;  %v140_v33 = vmul.f32 0.5, %v136_v29 }
  0xc5   :  { %211 = vtanh.f32 %v137_v30 }
  0xc6   :  { %213 = vtanh.f32 %v138_v31 }
  0xc7   :  { %215 = vtanh.f32 %v139_v32 }
  0xc8   :  { %217 = vtanh.f32 %v140_v33 }
  0xcf   :  { %v212_v36 = vpop.eup %211 }
  0xd0   :  { %v214_v37 = vpop.eup %213  ;;  %v145_v38 = vadd.f32 1.0, %v212_v36 }
  0xd1   :  { %v216_v39 = vpop.eup %215  ;;  %v146_v41 = vadd.f32 1.0, %v214_v37 }
  0xd2   :  { %v218_v42 = vpop.eup %217  ;;  %v147_v43 = vadd.f32 1.0, %v216_v39  ;;  %v149_v45 = vmul.f32 0.5, %v145_v38 }
  0xd3   :  { %v148_v44 = vadd.f32 1.0, %v218_v42  ;;  %v150_v46 = vmul.f32 0.5, %v146_v41 }
  0xd4   :  { %v151_v47 = vmul.f32 0.5, %v147_v43 }
  0xd5   :  { %v152_v49 = vmul.f32 0.5, %v148_v44  ;;  %v157_v50 = vcombine.low %v149_v45, %v150_v46 }
  0xd7   :  { %v165_v51 = vcombine.low %v151_v47, %v152_v49  ;;  %v164_v53 = vrot.slane %v157_v50, %v163_v48 }
  0xd9   :  { %v172_v52 = vrot.slane %v165_v51, %v163_v48 }
  0xdb   :  { %v177_v54 = vrot.slane %v172_v52, 7 }
  0xdd   :  { %v179_v55 = vsel %vm178_vm5, %v177_v54, %v164_v53 }
  0xde   :  { %v181_v56 = vsel %vm180_vm6, %v177_v54, %v179_v55 }
  0xdf   :  { %v183_v57 = vsel %vm182_vm7, %v177_v54, %v181_v56 }
  0xe0   :  { %v185_v58 = vsel %vm184_vm8, %v177_v54, %v183_v57 }
  0xe1   :  { %187 = vst [vmem:[#allocation5] sm:$0xf] %v185_v58 }
  0xe2   :  { %252 = shalt.err (!%p249_p12)
}
  0xe3   :  { %s253_s28 = scalar_lea.hbm %s324_s2, 64 }
  0xe4   :  { %p254_p13 = scmp.ne.s32.totalorder %s324_s2, %s253_s28  ;;  %p257_p0 = scmp.lt.u32.totalorder %s253_s28, %s324_s2 }
  0xe6   :  { %p259_p1 = pnand %p257_p0, %p254_p13 }
  0xe8   :  { %262 = shalt.err (!%p259_p1)
}
  0xe9   :  { %197 = dma.vmem_to_hbm [thread:$0]  %s195_s24, 64, %s324_s2, [#allocation4]  }
  0xea   :  { %265 = dma.done.wait [#allocation4], 64  }
  0xeb   :  { %266 = vsyncadd [#allocation4], 4294967232 }
  0xec   :  { %201 = vsyncpa [#allocation3], 1 }
  0xed   :  { %202 = vsyncpa [#allocation4], 1 }

</bundles_post_ra>
